<compile_context>
chip_gen: v7x
topology: tpu7x:2x2x1
jax: 0.10.0
libtpu: 0.0.40
codegen_flags: <defaults>
</compile_context>

<pallas_src>
import jax
import jax.numpy as jnp
from jax import lax
from jax.experimental import pallas as pl
from jax.experimental.pallas import tpu as pltpu

MC_SAMPLES = 8
BLOCK_SIZE = 8
DROP_PROB = 0.5
HW_TILE = 4096  # lane-dim tile for the flattened H*W axis (multiple of 128)


def _dropblock_masks_and_scales(key, s_count, n, h, w,
                                block_size=BLOCK_SIZE, drop_prob=DROP_PROB):
    """DropBlock2D (training mode) masks for all MC samples of one level.

    Matches the reference: Bernoulli(gamma) seed over [N, H, W] (per sample) ->
    max_pool(k=block_size, s=1, p=block_size//2) (drop last row/col for even
    block_size) -> block_mask = 1 - pooled; scale = numel / sum(block_mask).
    Returns block_mask [N, S, H, W] f32 and scales [S] f32.
    """
    # TODO(synk): mask generation could move in-kernel (pltpu.prng_random_bits +
    # separable max via pltpu.roll) to avoid materializing masks in HBM.
    gamma = drop_prob / (block_size ** 2)
    bern = (jax.random.uniform(key, (n, s_count, h, w)) < gamma).astype(jnp.float32)
    pad = block_size // 2
    # Separable max pool (H pass then W pass) == 2-D max pool, 8+8 compares/elt.
    pooled = lax.reduce_window(
        bern, -jnp.inf, lax.max,
        window_dimensions=(1, 1, block_size, 1), window_strides=(1, 1, 1, 1),
        padding=((0, 0), (0, 0), (pad, pad), (0, 0)))
    pooled = lax.reduce_window(
        pooled, -jnp.inf, lax.max,
        window_dimensions=(1, 1, 1, block_size), window_strides=(1, 1, 1, 1),
        padding=((0, 0), (0, 0), (0, 0), (pad, pad)))
    if block_size % 2 == 0:
        pooled = pooled[:, :, :-1, :-1]
    block_mask = 1.0 - pooled                       # [N, S, H, W]
    sums = jnp.sum(block_mask, axis=(0, 2, 3))      # per-sample sum -> [S]
    numel = float(n * h * w)
    # torch would give inf (-> NaN output) if every position were dropped
    # (practically impossible at gamma = drop_prob / 64); guard it anyway.
    scales = jnp.where(sums > 0, numel / jnp.maximum(sums, 1.0), 0.0)
    return block_mask, scales


def _make_level_kernel(hw, hwt, has_partial_tile):
    """Kernel for one FPN level: masked channel-sum over the flattened HW axis."""

    def kernel(x_ref, m_ref, out_ref):
        # x_ref:  [C, HWT] f32   feature tile of one image (bf16 cast in-kernel)
        # m_ref:  [S, HWT] bf16  DropBlock masks tile (all MC samples; 0/1 exact)
        # out_ref:[S, C]   f32   resident accumulator across the HW grid axis
        k = pl.program_id(1)

        @pl.when(k == 0)
        def _init():
            out_ref[...] = jnp.zeros_like(out_ref)

        xb = x_ref[...].astype(jnp.bfloat16)
        m = m_ref[...]
        if has_partial_tile:
            # Zero the lanes of the (padded) last tile that fall beyond H*W so
            # out-of-bounds block padding never contributes to the sum.
            valid = hw - k * hwt
            lane = lax.broadcasted_iota(jnp.int32, m.shape, 1)
            m = jnp.where(lane < valid, m, jnp.zeros_like(m))

        # All MC samples in one MXU contraction over this HW tile:
        # (S, HWT) x (C, HWT) -> (S, C); bf16 streams, f32 accumulate.
        out_ref[...] += jnp.einsum('sh,ch->sc', m, xb,
                                   preferred_element_type=jnp.float32)

    return kernel


def _masked_channel_sums(x_flat, m_flat):
    """x_flat: [N, C, HW] f32; m_flat: [N, S, HW] bf16.
    Returns [N, S, C] f32 sums of mask * x over the HW axis."""
    n, c, hw = (int(d) for d in x_flat.shape)
    s_count = int(m_flat.shape[1])
    hwt = HW_TILE if hw > HW_TILE else hw      # tiny levels: full-dim block
    num_tiles = pl.cdiv(hw, hwt)

    # Explicit VMEM budget (v5e default scoped limit is only 16 MiB):
    # double-buffered input tiles + double-buffered output block + slack.
    vmem_limit = 2 * (c * hwt * 4 + s_count * hwt * 2) + 2 * s_count * c * 4
    vmem_limit = int(vmem_limit + (16 << 20))

    return pl.pallas_call(
        _make_level_kernel(hw, hwt, hw % hwt != 0),
        out_shape=jax.ShapeDtypeStruct((n, s_count, c), jnp.float32),
        grid=(n, num_tiles),
        in_specs=[
            # feature: one image per grid row, tiled along flattened HW
            pl.BlockSpec((None, c, hwt), lambda i, k: (i, 0, k)),
            # masks: same HW tiling, all MC samples in-block
            pl.BlockSpec((None, s_count, hwt), lambda i, k: (i, 0, k)),
        ],
        # same block across the HW axis -> resident accumulator
        out_specs=pl.BlockSpec((None, s_count, c), lambda i, k: (i, 0, 0)),
        compiler_params=pltpu.CompilerParams(
            dimension_semantics=("parallel", "arbitrary"),  # N across TCs (v7x)
            vmem_limit_bytes=vmem_limit),
        cost_estimate=pl.CostEstimate(
            flops=2 * n * s_count * c * hw,
            bytes_accessed=n * c * hw * 4 + n * s_count * hw * 2
                           + n * s_count * c * 4,
            transcendentals=0),
    )(x_flat, m_flat)


def mc_sampler_rcnn_forward(features, key, mc_samples=MC_SAMPLES):
    """JAX/Pallas equivalent of MCSamplerRCNN.forward.

    features: list of [N, C, H, W] float32 arrays
              (model.model.proposal_generator.rpn_head.rpn_intermediate_output;
              all levels share N and C since the same RPN head produced them).
    Returns samples_t of shape [mc_samples, num_levels * N, C].
    """
    # TODO(synk): assumes N > 1 (torch.squeeze would also drop the batch dim
    # and change the concat layout when N == 1).
    outs = []
    for lvl, x in enumerate(features):
        n, c, h, w = (int(d) for d in x.shape)
        hw = h * w
        k = jax.random.fold_in(key, lvl)
        masks, scales = _dropblock_masks_and_scales(k, mc_samples, n, h, w)

        # Feature goes to the kernel as-is (reshape of contiguous NCHW is free;
        # bf16 cast happens in-kernel) -- no extra cast/pad/concat HBM pass.
        x_flat = x.reshape(n, c, hw)
        # Masks were generated directly in [N, S, H, W]; 0/1 is exact in bf16.
        m_flat = masks.reshape(n, mc_samples, hw).astype(jnp.bfloat16)

        sums = _masked_channel_sums(x_flat, m_flat)            # [N, S, C] f32
        # Per-sample DropBlock rescale and the 1/(H*W) of the two torch.means,
        # applied to the tiny [N, S, C] result in XLA.
        out_l = sums * (scales / hw)[None, :, None]
        outs.append(jnp.transpose(out_l, (1, 0, 2)))           # [S, N, C]

    # per sample: torch.cat over levels along the batch dim -> [S, L*N, C]
    return jnp.concatenate(outs, axis=1)


def _reference_forward(features, key, mc_samples=MC_SAMPLES):
    """Pure-JAX f32 reference with identical mask draws (for verification)."""
    outs = []
    for lvl, x in enumerate(features):
        n, c, h, w = (int(d) for d in x.shape)
        k = jax.random.fold_in(key, lvl)
        masks, scales = _dropblock_masks_and_scales(k, mc_samples, n, h, w)
        dropped = x[:, None] * masks[:, :, None]               # [N, S, C, H, W]
        means = jnp.mean(dropped, axis=(3, 4)) * scales[None, :, None]
        outs.append(jnp.transpose(means, (1, 0, 2)))           # [S, N, C]
    return jnp.concatenate(outs, axis=1)                       # [S, L*N, C]


if __name__ == "__main__":
    key = jax.random.PRNGKey(0)
    kf0, kf1, kdrop = jax.random.split(key, 3)
    # Synthetic rpn_intermediate_output: two FPN levels, NCHW, batch=2, C=16.
    feat0 = jax.random.normal(kf0, (2, 16, 16, 16), dtype=jnp.float32)
    feat1 = jax.random.normal(kf1, (2, 16, 8, 8), dtype=jnp.float32)

    out = mc_sampler_rcnn_forward([feat0, feat1], kdrop, mc_samples=MC_SAMPLES)
    out = jax.block_until_ready(out)

    assert out.shape == (MC_SAMPLES, 2 * 2, 16), out.shape
    assert bool(jnp.all(jnp.isfinite(out)))

    ref = _reference_forward([feat0, feat1], kdrop, mc_samples=MC_SAMPLES)
    max_err = float(jnp.max(jnp.abs(out - ref)))
    assert bool(jnp.allclose(out, ref, atol=2e-2, rtol=0.0)), max_err
    print("KERNEL_OK")
</pallas_src>

<mosaic_0001>
module attributes {stable_mosaic.version = 11 : i64} {
  func.func @kernel(%arg0: i32, %arg1: i32, %arg2: memref<1x16x256xf32, #tpu.memory_space<vmem>>, %arg3: memref<1x8x256xbf16, #tpu.memory_space<vmem>>, %arg4: memref<1x8x16xf32, #tpu.memory_space<vmem>>) attributes {dimension_semantics = [#tpu.dimension_semantics<parallel>, #tpu.dimension_semantics<arbitrary>], iteration_bounds = array<i64: 2, 1>, scalar_prefetch = 0 : i64, scratch_operands = 0 : i64, tpu.core_type = #tpu.core_type<tc>, window_params = [{transform_indices = @transform_0, window_bounds = array<i64: 1, 16, 256>}, {transform_indices = @transform_1, window_bounds = array<i64: 1, 8, 256>}, {transform_indices = @transform_2, window_bounds = array<i64: 1, 8, 16>}]} {
    %c0_i32 = arith.constant 0 : i32
    %0 = arith.cmpi eq, %arg1, %c0_i32 : i32
    %1 = arith.extui %0 : i1 to i32
    %c0_i32_0 = arith.constant 0 : i32
    %2 = arith.cmpi ne, %1, %c0_i32_0 : i32
    scf.if %2 {
      %cst_12 = arith.constant 0.000000e+00 : f32
      %15 = vector.broadcast %cst_12 : f32 to vector<8x16xf32>
      %c0_13 = arith.constant 0 : index
      %c0_14 = arith.constant 0 : index
      %c0_15 = arith.constant 0 : index
      %16 = vector.load %arg4[%c0_13, %c0_14, %c0_15] : memref<1x8x16xf32, #tpu.memory_space<vmem>>, vector<1x8x16xf32>
      %17 = vector.shape_cast %16 : vector<1x8x16xf32> to vector<8x16xf32>
      %18 = vector.shape_cast %15 : vector<8x16xf32> to vector<1x8x16xf32>
      tpu.vector_store %arg4[%c0_13, %c0_14, %c0_15], %18 {strides = array<i32>} : memref<1x8x16xf32, #tpu.memory_space<vmem>>, vector<1x8x16xf32>,
    } else {
    }
    %c0 = arith.constant 0 : index
    %c0_1 = arith.constant 0 : index
    %c0_2 = arith.constant 0 : index
    %3 = vector.load %arg2[%c0, %c0_1, %c0_2] : memref<1x16x256xf32, #tpu.memory_space<vmem>>, vector<1x16x256xf32>
    %4 = vector.shape_cast %3 : vector<1x16x256xf32> to vector<16x256xf32>
    %5 = arith.truncf %4 : vector<16x256xf32> to vector<16x256xbf16>
    %c0_3 = arith.constant 0 : index
    %c0_4 = arith.constant 0 : index
    %c0_5 = arith.constant 0 : index
    %6 = vector.load %arg3[%c0_3, %c0_4, %c0_5] : memref<1x8x256xbf16, #tpu.memory_space<vmem>>, vector<1x8x256xbf16>
    %7 = vector.shape_cast %6 : vector<1x8x256xbf16> to vector<8x256xbf16>
    %c0_6 = arith.constant 0 : index
    %c0_7 = arith.constant 0 : index
    %c0_8 = arith.constant 0 : index
    %8 = vector.load %arg4[%c0_6, %c0_7, %c0_8] : memref<1x8x16xf32, #tpu.memory_space<vmem>>, vector<1x8x16xf32>
    %9 = vector.shape_cast %8 : vector<1x8x16xf32> to vector<8x16xf32>
    "tpu.trace_start"() <{level = 10 : i32, message = "sh,ch->sc"}> : () -> ()
    %cst = arith.constant dense<0.000000e+00> : vector<8x16xf32>
    %10 = tpu.matmul %7, %5, %cst {dimension_numbers = #tpu.dot_dimension_numbers<[1], [1], [0], [0], [0, 0, 1, 0], [], []>} : vector<8x256xbf16>, vector<16x256xbf16>, vector<8x16xf32> -> vector<8x16xf32>
    "tpu.trace_stop"() : () -> ()
    %11 = arith.addf %9, %10 : vector<8x16xf32>
    %c0_9 = arith.constant 0 : index
    %c0_10 = arith.constant 0 : index
    %c0_11 = arith.constant 0 : index
    %12 = vector.load %arg4[%c0_9, %c0_10, %c0_11] : memref<1x8x16xf32, #tpu.memory_space<vmem>>, vector<1x8x16xf32>
    %13 = vector.shape_cast %12 : vector<1x8x16xf32> to vector<8x16xf32>
    %14 = vector.shape_cast %11 : vector<8x16xf32> to vector<1x8x16xf32>
    tpu.vector_store %arg4[%c0_9, %c0_10, %c0_11], %14 {strides = array<i32>} : memref<1x8x16xf32, #tpu.memory_space<vmem>>, vector<1x8x16xf32>,
    return
  }
  func.func @transform_0(%arg0: i32, %arg1: i32) -> (i32, i32, i32) {
    %c0_i32 = arith.constant 0 : i32
    %c0_i32_0 = arith.constant 0 : i32
    return %arg0, %c0_i32, %arg1 : i32, i32, i32
  }
  func.func @transform_1(%arg0: i32, %arg1: i32) -> (i32, i32, i32) {
    %c0_i32 = arith.constant 0 : i32
    %c0_i32_0 = arith.constant 0 : i32
    return %arg0, %c0_i32, %arg1 : i32, i32, i32
  }
  func.func @transform_2(%arg0: i32, %arg1: i32) -> (i32, i32, i32) {
    %c0_i32 = arith.constant 0 : i32
    %c0_i32_0 = arith.constant 0 : i32
    %c0_i32_1 = arith.constant 0 : i32
    return %arg0, %c0_i32, %c0_i32_0 : i32, i32, i32
  }
}

</mosaic_0001>

<bundles_post_ra>
// kernel: tpu_custom_call.1
= control target key start
LH: loop header
LB: loop body
LE: loop exit
PB: predicated region body
PF: predicated region fallthrough
CT: control target
= control target key end

     0   :  { %7 = vsyncpa [#allocation3], 0  ;;  %s888_s0 = inlined_call_operand.hbm [shape: f32[2,16,256], index: 0, kind: input, shape index: {}]   ;;  %s889_s1 = inlined_call_operand.hbm [shape: bf16[2,8,256], index: 1, kind: input, shape index: {}]   ;;  %s890_s2 = inlined_call_operand.hbm [shape: f32[2,8,16], index: 2, kind: output, shape index: {}]  }
   0x1   :  { %9 = vsyncpa [#allocation3 + $0x1], 0 }
   0x2   :  { %10 = vsyncpa [#allocation6], 0 }
   0x3   :  { %12 = vsyncpa [#allocation6 + $0x1], 0 }
   0x4   :  { %13 = vsyncpa [#allocation4], 0 }
   0x5   :  { %15 = vsyncpa [#allocation4 + $0x1], 0  ;;  %s671_s9 = smov 0   ;;  %s673_s10 = smov 0  }
   0x6   :  { %s675_s11 = smov 0   ;;  %s677_s12 = smov 0  }
   0x7   :  { %s679_s13 = smov 0   ;;  %s681_s14 = smov 0  }
   0x8 LB: > { %s408_s15 = sadd.s32 4294967295, %s648_s14   ;;  %s409_s16 = sadd.s32 4294967294, %s648_s14   ;;  %s648_s14 = sphi %s681_s14, %s21_s14   ;;  %s644_s13 = sphi %s679_s13, %s909_s13   ;;  %s640_s12 = sphi %s677_s12, %s908_s12   ;;  %s636_s11 = sphi %s675_s11, %s907_s11   ;;  %s632_s10 = sphi %s673_s10, %s906_s10   ;;  %s628_s9 = sphi %s671_s9, %s905_s9  }
   0x9   : > { %s33_s17 = sadd.s32 1, %s644_s13  ;;  %s42_s18 = sadd.s32 1, %s636_s11 }
   0xa   : > { %p35_p0 = scmp.ge.s32.totalorder %s33_s17, 2  ;;  %p49_p1 = scmp.ne.s32.totalorder %s636_s11, %s632_s10 }
   0xb   : > { %p50_p2 = scmp.eq.s32.totalorder %s648_s14, 0  ;;  %p55_p3 = scmp.ne.s32.totalorder %s632_s10, %s628_s9 }
   0xc   : > { %s911_s17 = smov (%p35_p0, %s33_s17), 0  ;;  %p56_p5 = scmp.eq.s32.totalorder %s408_s15, 0 }
   0xd   : > { %p712_p4 = por %p50_p2, %p49_p1  ;;  %s37_s20 = ssub.s32 %s644_s13, %s911_s17 }
   0xe   : > { %p107_p6 = scmp.eq.s32.totalorder %s408_s15, 1  ;;  %p40_p7 = scmp.eq.s32.totalorder %s37_s20, 0 }
   0xf   : > { %p718_p8 = por %p56_p5, %p55_p3  ;;  %p113_p10 = scmp.eq.s32.totalorder %s409_s16, 1 }
  0x10   : > { %p722_p9 = por %p107_p6, %p49_p1  ;;  %p447_p13 = scmp.lt.s32.totalorder %s648_s14, 2 }
  0x11   : > { %s894_s21 = scalar_select %p718_p8, 1, 0 }
  0x12   : > { %s895_s22 = scalar_select %p722_p9, 1, 0 }
  0x13   : > { %s727_s23 = scalar_select %p40_p7, %s636_s11, %s42_s18  }
  0x14   : > { %p729_p11 = por %p113_p10, %p55_p3  ;;  %s736_s25 = sand.u32 1, %s636_s11  }
  0x15   : > { %s412_s26 = sshll.u32 %s736_s25, 5  ;;  %s428_s27 = sshll.u32 %s644_s13, 9 }
  0x16   : > { %s896_s24 = scalar_select %p729_p11, 1, 0 }
  0x17   : > { %s743_s30 = scalar_lea.hbm %s888_s0, %s428_s27  ;;  %s137_s3 = scalar_lea.vmem [#allocation2], %s412_s26 }
  0x18   : > { %s146_s4 = sshll.u32 %s137_s3, 4  ;;  %p749_p0 = pnand %p447_p13, %p712_p4  ;;  %s745_s4 = int_to_ptr.vmem [resolvable:$true] %s146_s4 }
  0x19   : > { %s134_s6 = scalar_lea.sflag [#allocation3], %s736_s25  ;;  %s502_s7 = scalar_lea.hbm %s743_s30, 512 }
  0x1a   : > { %p503_p2 = scmp.ne.s32.totalorder %s743_s30, %s502_s7  ;;  %p504_p3 = pneg %p749_p0 }
  0x1b   : > { %s507_s16 = scalar_lea.hbm %s888_s0, 1024  ;;  %p508_p4 = scmp.lt.u32.totalorder %s743_s30, %s888_s0 }
  0x1c   : > { %p505_p5 = pnand %p504_p3, %p503_p2  ;;  %p509_p7 = scmp.lt.u32.totalorder %s507_s16, %s502_s7 }
  0x1d   : > { %p511_p13 = scmp.lt.u32.totalorder %s502_s7, %s743_s30 }
  0x1e   : > { %p506_p6 = pneg %p505_p5  ;;  %p510_p10 = por %p509_p7, %p508_p4 }
  0x20   : > { %p512_p12 = por %p511_p13, %p510_p10 }
  0x22   : > { %p513_p1 = pnand %p512_p12, %p506_p6 }
  0x24   : > { %516 = shalt.err (!%p513_p1)
}
  0x25   : > { %s517_s20 = scalar_lea.vmem %s745_s4, 512  ;;  %s650_s26 = smov [#allocation2]  }
  0x26   : > { %p518_p2 = scmp.ne.s32.totalorder %s745_s4, %s517_s20  ;;  %s522_s27 = sshll.u32 %s650_s26, 4  ;;  %s523_s27 = int_to_ptr.vmem [resolvable:$false] %s522_s27 }
  0x27   : > { %s524_s28 = scalar_lea.vmem %s523_s27, 1024  ;;  %p525_p9 = scmp.lt.s32.totalorder %s745_s4, %s523_s27 }
  0x28   : > { %p520_p5 = pnand %p518_p2, %p504_p3  ;;  %p526_p4 = scmp.lt.s32.totalorder %s524_s28, %s517_s20 }
  0x2a   : > { %p521_p11 = pneg %p520_p5  ;;  %p527_p7 = por %p526_p4, %p525_p9 }
  0x2c   : > { %p528_p10 = pnand %p527_p7, %p521_p11 }
  0x2e   : > { %531 = shalt.err (!%p528_p10)
}
  0x2f   : > { %s651_s29 = smov 256   ;;  %s652_s3 = smov 16  }
  0x30   : > { %439 = dma.hbm_to_vmem [thread:$0]  (!%p749_p0), %s743_s30, 512, %s745_s4, %s134_s6, %s651_s29, %s651_s29, %s652_s3  }
  0x31   : > { %p175_p12 = scmp.lt.s32.totalorder %s648_s14, 3  ;;  %s415_s7 = sshll.u32 %s736_s25, 3 }
  0x32   : > { %s429_s8 = sshll.u32 %s644_s13, 7  ;;  %p898_p9 = scmp.ge.s32.totalorder %s648_s14, 1 }
  0x33   : > { %s794_s19 = scalar_lea.hbm %s889_s1, %s429_s8  ;;  %s160_s20 = scalar_lea.vmem [#allocation5], %s415_s7 }
  0x34   : > { %p787_p11 = pnand %p898_p9, %p175_p12  ;;  %s170_s26 = sshll.u32 %s160_s20, 4  ;;  %s171_s26 = int_to_ptr.vmem [resolvable:$true] %s170_s26 }
  0x35   : > { %s157_s30 = scalar_lea.sflag [#allocation6], %s736_s25  ;;  %s532_s4 = scalar_lea.hbm %s794_s19, 128 }
  0x36   : > { %s899_s15 = scalar_select %p787_p11, 1, 0 }
  0x37   : > { %p533_p1 = scmp.ne.s32.totalorder %s794_s19, %s532_s4  ;;  %s537_s28 = scalar_lea.hbm %s889_s1, 256 }
  0x38   : > { %p538_p2 = scmp.lt.u32.totalorder %s794_s19, %s889_s1  ;;  %p539_p5 = scmp.lt.u32.totalorder %s537_s28, %s532_s4 }
  0x39   : > { %p535_p6 = pnand %p533_p1, %p504_p3  ;;  %p541_p7 = scmp.lt.u32.totalorder %s532_s4, %s794_s19 }
  0x3a   : > { %p540_p4 = por %p539_p5, %p538_p2 }
  0x3b   : > { %p536_p13 = pneg %p535_p6 }
  0x3c   : > { %p542_p10 = por %p541_p7, %p540_p4 }
  0x3e   : > { %p543_p12 = pnand %p542_p10, %p536_p13 }
  0x40   : > { %546 = shalt.err (!%p543_p12)
}
  0x41   : > { %s547_s25 = scalar_lea.vmem %s171_s26, 128  ;;  %s653_s7 = smov [#allocation5]  }
  0x42   : > { %p548_p9 = scmp.ne.s32.totalorder %s171_s26, %s547_s25  ;;  %s552_s8 = sshll.u32 %s653_s7, 4  ;;  %s553_s8 = int_to_ptr.vmem [resolvable:$false] %s552_s8 }
  0x43   : > { %s554_s16 = scalar_lea.vmem %s553_s8, 256  ;;  %p555_p8 = scmp.lt.s32.totalorder %s171_s26, %s553_s8 }
  0x44   : > { %p550_p1 = pnand %p548_p9, %p504_p3  ;;  %p556_p11 = scmp.lt.s32.totalorder %s554_s16, %s547_s25 }
  0x46   : > { %p551_p6 = pneg %p550_p1  ;;  %p557_p2 = por %p556_p11, %p555_p8 }
  0x48   : > { %p558_p5 = pnand %p557_p2, %p551_p6 }
  0x4a   : > { %561 = shalt.err (!%p558_p5)
}
  0x4b   : > { %442 = dma.hbm_to_vmem [thread:$0]  (!%p749_p0), %s794_s19, 128, %s171_s26, %s157_s30  }
  0x4c   : > { %p900_p13 = scmp.ne.s32.totalorder %s899_s15, 0 }
  0x4d   : > { %s819_s18 = sand.u32 (!%p900_p13), 1, %s632_s10   ;;  %p901_p3 = scmp.ne.s32.totalorder (!%p900_p13), %s894_s21, 0 }
  0x4e   : > { %179 = sbr.rel (%p900_p13) target bundleno = 328 (0x148), region = 28  ;;  %s419_s20 = sshll.u32 (!%p900_p13), %s819_s18, 5 }
  0x4f   : > { %s182_s4 = scalar_lea.sflag (!%p900_p13), [#allocation3], %s819_s18  ;;  %s185_s6 = scalar_lea.vmem (!%p900_p13), [#allocation2], %s419_s20 }
  0x55   : > { %615 = dma.done.wait (%p901_p3), %s182_s4, 512  }
  0x56   : > { %617 = vsyncadd (%p901_p3), %s182_s4, 4294966784  ;;  %s420_s5 = sshll.u32 %s819_s18, 3  ;;  %s191_s15 = scalar_lea.sflag [#allocation6], %s819_s18 }
  0x57   : > { %s194_s19 = scalar_lea.vmem [#allocation5], %s420_s5 }
  0x58   : > { %619 = dma.done.wait (%p901_p3), %s191_s15, 128  }
  0x59   : > { %621 = vsyncadd (%p901_p3), %s191_s15, 4294967168  ;;  %vm227_vm0 = vcmask 130048   ;;  %s219_s26 = scalar_lea.vmem [#allocation7], %s420_s5  ;;  %v654_v0 = vmov 0.0   ;;  %v230_v1 = vld [vmem:[%s185_s6 + $0x8] sm:$0xff]  ;;  %v232_v2 = vld [vmem:[%s185_s6 + $0x18] sm:$0xff] }
  0x5a   : > { %228 = vst.msk [vmem:[%s219_s26] sm:$0xff] %vm227_vm0, %v654_v0  ;;  %v229_v3 = vld [vmem:[%s185_s6] sm:$0xff]  ;;  %v234_v4 = vpack.c.bf16 %v232_v2, %v230_v1  ;;  %v231_v5 = vld [vmem:[%s185_s6 + $0x10] sm:$0xff]  ;;  %s425_s21 = sshll.u32 %s640_s12, 7  ;;  %s301_s30 = sshll.u32 %s219_s26, 4  ;;  %s840_s30 = int_to_ptr.vmem [resolvable:$true] %s301_s30 }
  0x5b   : > { %v235_v6 = vld [vmem:[%s194_s19] sm:$0xff]  ;;  %v233_v7 = vpack.c.bf16 %v231_v5, %v229_v3  ;;  %s838_s29 = scalar_lea.hbm %s890_s2, %s425_s21  ;;  %s288_s3 = scalar_lea.sflag [#allocation4], %s819_s18 }
  0x5c   : > { %v423_v8 = vcombine.high %v235_v6, %v235_v6  ;;  %244 = vmatprep.subr.bf16.mxu0 %v234_v4  ;;  %v422_v9 = vcombine.low %v235_v6, %v235_v6  ;;  %s562_s12 = scalar_lea.vmem %s840_s30, 128  ;;  %p902_p0 = scmp.ne.s32.totalorder %s895_s22, 0 }
  0x5d   : > { %245 = vmatpush1.bf16.xpose.msra.mxu0 %v233_v7  ;;  %p563_p8 = scmp.ne.s32.totalorder %s840_s30, %s562_s12  ;;  %s655_s25 = smov [#allocation7]  }
  0x5e   : > { %276 = vmatprep.mubr.bf16.mxu0 %v423_v8  ;;  %s566_s7 = sshll.u32 %s655_s25, 4  ;;  %s567_s7 = int_to_ptr.vmem [resolvable:$false] %s566_s7 }
  0x5f   : > { %p564_p11 = pnand %p563_p8, %p902_p0  ;;  %s568_s8 = scalar_lea.vmem %s567_s7, 256 }
  0x60   : > { %p569_p7 = scmp.lt.s32.totalorder %s840_s30, %s567_s7  ;;  %p570_p10 = scmp.lt.s32.totalorder %s568_s8, %s562_s12 }
  0x61   : > { %v236_v10 = vld [vmem:[%s219_s26] sm:$0xff]  ;;  %p565_p4 = pneg %p564_p11 }
  0x62   : > { %p571_p12 = por %p570_p10, %p569_p7 }
  0x64   : > { %277 = vmatmul.mubr.bf16.vlgmr.msra.gmra.mrb[0].mxu0 %v422_v9  ;;  %p572_p9 = pnand %p571_p12, %p565_p4 }
 0x137   : > { %v278_v11 = vpop.f32.mrb[0].mxu0 }
 0x138   : > { %v284_v12 = vadd.f32 %v278_v11, %v236_v10  ;;  %v280_v13 = vpop.f32.mrb[1].mxu0 }
 0x139   : > { %v281_v14 = vpop.f32.mrb[2].mxu0 }
 0x13a   : > { %286 = vst.msk [vmem:[%s219_s26] sm:$0xff] %vm227_vm0, %v284_v12  ;;  %v282_v15 = vpop.f32.mrb[3].mxu0 }
 0x13b   : > { %575 = shalt.err (!%p572_p9)
}
 0x13c   : > { %s576_s16 = scalar_lea.hbm %s838_s29, 128  ;;  %s580_s4 = scalar_lea.hbm %s890_s2, 256 }
 0x13d   : > { %p577_p1 = scmp.ne.s32.totalorder %s838_s29, %s576_s16  ;;  %p581_p5 = scmp.lt.u32.totalorder %s838_s29, %s890_s2 }
 0x13e   : > { %p582_p13 = scmp.lt.u32.totalorder %s580_s4, %s576_s16  ;;  %p584_p8 = scmp.lt.u32.totalorder %s576_s16, %s838_s29 }
 0x13f   : > { %p578_p6 = pnand %p577_p1, %p902_p0 }
 0x140   : > { %p583_p3 = por %p582_p13, %p581_p5 }
 0x141   : > { %p579_p2 = pneg %p578_p6 }
 0x142   : > { %p585_p11 = por %p584_p8, %p583_p3 }
 0x144   : > { %p586_p4 = pnand %p585_p11, %p579_p2 }
 0x146   : > { %589 = shalt.err (!%p586_p4)
}
 0x147   : > { %434 = dma.vmem_to_hbm [thread:$0]  (%p902_p0), %s840_s30, 128, %s838_s29, %s288_s3  }
 0x148 PF: > { %s313_s15 = sand.u32 1, %s628_s9   ;;  %p903_p7 = scmp.ne.s32.totalorder %s896_s24, 0 }
 0x149   : > { %p904_p10 = scmp.ge.s32.totalorder %s648_s14, 2  ;;  %s314_s19 = scalar_lea.sflag [#allocation4], %s313_s15 }
 0x14b   : > { %p444_p12 = pnand %p904_p10, %p903_p7 }
 0x14d   : > { %623 = dma.done.wait (!%p444_p12), %s314_s19, 128  }
 0x14e   : > { %625 = vsyncadd (!%p444_p12), %s314_s19, 4294967168  ;;  %s21_s14 = sadd.s32 1, %s648_s14   ;;  %s905_s9 = smov %s632_s10 }
 0x14f   : > { %p18_p9 = scmp.ge.s32.totalorder %s21_s14, 4   ;;  %s906_s10 = smov %s636_s11 }
 0x150   : > { %s907_s11 = smov %s727_s23  ;;  %s908_s12 = smov %s644_s13 }
 0x151   : > { %s909_s13 = smov %s911_s17  ;;  %20 = sbr.rel (!%p18_p9) target bundleno = 8 (0x8), region = 90 }
 0x158   :  { %319 = vsyncpa [#allocation3], 1 }
 0x159   :  { %321 = vsyncpa [#allocation3 + $0x1], 1 }
 0x15a   :  { %322 = vsyncpa [#allocation6], 1 }
 0x15b   :  { %324 = vsyncpa [#allocation6 + $0x1], 1 }
 0x15c   :  { %325 = vsyncpa [#allocation4], 1 }
 0x15d   :  { %327 = vsyncpa [#allocation4 + $0x1], 1 }

</bundles_post_ra>
